<compile_context>
chip_gen: v7x
topology: tpu7x:2x2x1
jax: 0.10.0
libtpu: 0.0.40
codegen_flags: <defaults>
</compile_context>

<pallas_src>
import math

import jax
import jax.numpy as jnp
from jax import lax
from jax.experimental import pallas as pl
from jax.experimental.pallas import tpu as pltpu

_LN_EPS = 1e-5


def _compressor_kernel(pre_ref, att_ref, w1_ref, w2_ref, p_ref, o_ref, acc_ref):
    k = pl.program_id(1)

    @pl.when(k == 0)
    def _():
        acc_ref[...] = jnp.zeros_like(acc_ref)

    # Compute dtype follows the weights (e.g. bf16 weights -> bf16 MXU passes);
    # the cast happens on the VMEM tile, never as a separate XLA pass over HBM.
    cdt = w1_ref.dtype
    a = pre_ref[...].astype(cdt)
    b = att_ref[...].astype(cdt)

    # cat([pre, att]) @ W.T == pre @ W1 + att @ W2, accumulated over k tiles.
    acc_ref[...] += (
        jnp.dot(a, w1_ref[...], preferred_element_type=jnp.float32)
        + jnp.dot(b, w2_ref[...], preferred_element_type=jnp.float32)
    )

    @pl.when(k == pl.num_programs(1) - 1)
    def _():
        acc_ref[...] += p_ref[0:1, :]          # + bias, in place (no extra (tm,D) temp)
        y = acc_ref[...]
        inv_d = 1.0 / y.shape[-1]
        mean = jnp.sum(y, axis=-1, keepdims=True) * inv_d
        yc = y - mean
        # Centered (two-pass) variance: robust to |mean| >> std cancellation.
        var = jnp.sum(yc * yc, axis=-1, keepdims=True) * inv_d
        yhat = yc * lax.rsqrt(var + _LN_EPS)
        o_ref[...] = (yhat * p_ref[1:2, :] + p_ref[2:3, :]).astype(o_ref.dtype)


def prepare_compressor_params(W, b, gamma, beta, *, weight_dtype=None):
    """One-time (parameter-load-time) conversion from the torch layout.

    W: [D, 2D] (nn.Linear(2*D, D).weight); b/gamma/beta: [D].
    Returns W1, W2 in [D_in, D_out] layout (optionally cast, e.g. bfloat16)
    and a fused (3, D) float32 array stacking (bias, gamma, beta).
    """
    D = W.shape[0]
    assert W.shape == (D, 2 * D)
    wdtype = weight_dtype if weight_dtype is not None else W.dtype
    W1 = jnp.asarray(W[:, :D].T, dtype=wdtype)   # acts on pre_attended
    W2 = jnp.asarray(W[:, D:].T, dtype=wdtype)   # acts on attended
    ln_params = jnp.stack([b, gamma, beta], axis=0).astype(jnp.float32)
    return W1, W2, ln_params


def _round_up(x, m):
    return (x + m - 1) // m * m


def _cdiv(a, b):
    return (a + b - 1) // b


def dense_compressor(pre_attended, attended, W1, W2, ln_params, *,
                     tm_max=512, vmem_budget_bytes=None):
    """pre_attended/attended: [..., D]; W1, W2: [D, D] in [D_in, D_out] layout;
    ln_params: (3, D) = stacked (bias, gamma, beta) from prepare_compressor_params."""
    D = W1.shape[0]
    assert pre_attended.shape == attended.shape
    assert pre_attended.shape[-1] == D
    assert W1.shape == (D, D) and W2.shape == (D, D)
    assert ln_params.shape == (3, D)

    orig_shape = pre_attended.shape
    out_dtype = pre_attended.dtype

    # Collapsing leading dims is a free (layout-preserving) reshape; no astype
    # or pad pass over HBM happens in the wrapper.
    pre2d = pre_attended.reshape(-1, D)
    att2d = attended.reshape(-1, D)
    N = pre2d.shape[0]

    in_bytes = jnp.dtype(pre2d.dtype).itemsize
    w_bytes = jnp.dtype(W1.dtype).itemsize
    out_bytes = jnp.dtype(out_dtype).itemsize

    # ---- generation-aware VMEM budget ------------------------------------
    try:
        vmem_cap = int(pltpu.get_tpu_info().vmem_capacity_bytes)
    except Exception:
        vmem_cap = 64 * 1024 * 1024            # conservative: v7x per-TC VMEM
    if vmem_budget_bytes is None:
        vmem_budget_bytes = vmem_cap - 16 * 1024 * 1024
    vmem_budget_bytes = max(8 * 1024 * 1024,
                            min(int(vmem_budget_bytes),
                                vmem_cap - 8 * 1024 * 1024))

    def footprint(tm_, tk_):
        rows = 2 * 2 * tm_ * tk_ * in_bytes    # pre + att tiles, double-buffered
        wts = 2 * 2 * tk_ * D * w_bytes        # W1 + W2 slabs (2x buffers, conservative)
        outb = 2 * tm_ * D * out_bytes         # output tile, double-buffered
        acc = tm_ * D * 4                      # f32 accumulator scratch
        epi = tm_ * D * 4                      # LayerNorm-epilogue temporaries
        par = 2 * 8 * D * 4                    # fused (bias,gamma,beta), sublane padded
        return rows + wts + outb + acc + epi + par

    # ---- row tile ----------------------------------------------------------
    if N >= 512:
        # Keep at least 2 "parallel" row steps so both v7x TensorCores get work.
        tm = min(tm_max, max(256, (_cdiv(N, 2) // 256) * 256))
    else:
        tm = min(tm_max, _round_up(N, 8))
    tm = max(8, _round_up(tm, 8))

    # ---- contraction tile: keep full weights VMEM-resident when they fit ---
    tm_floor = min(tm, 256)
    if D % 128 != 0 or footprint(tm_floor, D) <= vmem_budget_bytes:
        tk = D        # constant weight index_map -> W1/W2 fetched from HBM once
    else:
        tk = None
        for step in (256, 128):               # prefer 256-deep feeds (v6e/v7x MXU)
            t = (D // step) * step
            while t >= step:
                if D % t == 0 and footprint(tm_floor, t) <= vmem_budget_bytes:
                    tk = t
                    break
                t -= step
            if tk is not None:
                break
        if tk is None:
            tk = 128 if D % 128 == 0 else D

    # Shrink tm if needed to fit the budget.
    while tm > 8 and footprint(tm, tk) > vmem_budget_bytes:
        tm = max(8, _round_up(tm // 2, 8))

    grid = (_cdiv(N, tm), _cdiv(D, tk))        # ragged N handled by masked last block

    cost = pl.CostEstimate(
        flops=4 * N * D * D,
        transcendentals=0,
        bytes_accessed=(2 * N * D * in_bytes + 2 * D * D * w_bytes
                        + 3 * D * 4 + N * D * out_bytes),
    )

    out = pl.pallas_call(
        _compressor_kernel,
        out_shape=jax.ShapeDtypeStruct((N, D), out_dtype),
        grid_spec=pltpu.PrefetchScalarGridSpec(
            num_scalar_prefetch=0,
            grid=grid,
            in_specs=[
                pl.BlockSpec((tm, tk), lambda i, k: (i, k)),   # pre rows
                pl.BlockSpec((tm, tk), lambda i, k: (i, k)),   # att rows
                pl.BlockSpec((tk, D), lambda i, k: (k, 0)),    # W1 slab (constant when tk==D)
                pl.BlockSpec((tk, D), lambda i, k: (k, 0)),    # W2 slab (constant when tk==D)
                pl.BlockSpec((3, D), lambda i, k: (0, 0)),     # fused bias/gamma/beta
            ],
            out_specs=pl.BlockSpec((tm, D), lambda i, k: (i, 0)),
            scratch_shapes=[pltpu.VMEM((tm, D), jnp.float32)],
        ),
        compiler_params=pltpu.CompilerParams(
            dimension_semantics=("parallel", "arbitrary"),
            vmem_limit_bytes=int(vmem_budget_bytes),
        ),
        cost_estimate=cost,
    )(pre2d, att2d, W1, W2, ln_params)

    return out.reshape(orig_shape)


def _reference(pre, att, W, b, gamma, beta):
    combined = jnp.concatenate([pre, att], axis=-1)
    y = combined @ W.T + b
    mean = jnp.mean(y, axis=-1, keepdims=True)
    var = jnp.mean((y - mean) ** 2, axis=-1, keepdims=True)
    return (y - mean) / jnp.sqrt(var + _LN_EPS) * gamma + beta


if __name__ == "__main__":
    key = jax.random.PRNGKey(0)
    k_pre, k_att, k_w, k_b = jax.random.split(key, 4)

    D = 128  # embed_dim: multiple of 128 -> lane-dense stores / full vregs

    # Deterministic parameters matching nn.Linear(2D, D) / nn.LayerNorm(D) shapes.
    bound = 1.0 / math.sqrt(2.0 * D)
    W = jax.random.uniform(k_w, (D, 2 * D), minval=-bound, maxval=bound,
                           dtype=jnp.float32)
    b = jax.random.uniform(k_b, (D,), minval=-bound, maxval=bound,
                           dtype=jnp.float32)
    gamma = jnp.ones((D,), dtype=jnp.float32)
    beta = jnp.zeros((D,), dtype=jnp.float32)

    # ---- f32 weights, even row count -------------------------------------
    B, S = 2, 8
    pre = jax.random.normal(k_pre, (B, S, D), dtype=jnp.float32)
    att = jax.random.normal(k_att, (B, S, D), dtype=jnp.float32)

    W1, W2, ln_params = prepare_compressor_params(W, b, gamma, beta)
    out = jax.block_until_ready(dense_compressor(pre, att, W1, W2, ln_params))
    ref = _reference(pre, att, W, b, gamma, beta)
    assert out.shape == (B, S, D)
    assert jnp.allclose(out, ref, atol=5e-4, rtol=5e-4), "f32 path mismatch"

    # ---- bf16 weights, ragged row count (exercises masked last row block) --
    B2, S2 = 3, 7
    pre2 = jax.random.normal(k_pre, (B2, S2, D), dtype=jnp.float32)
    att2 = jax.random.normal(k_att, (B2, S2, D), dtype=jnp.float32)

    W1b, W2b, ln_params_b = prepare_compressor_params(
        W, b, gamma, beta, weight_dtype=jnp.bfloat16)
    out2 = jax.block_until_ready(
        dense_compressor(pre2, att2, W1b, W2b, ln_params_b))

    # Reference evaluated on the same bf16-rounded operands (f32 math).
    pre2r = pre2.astype(jnp.bfloat16).astype(jnp.float32)
    att2r = att2.astype(jnp.bfloat16).astype(jnp.float32)
    Wr = jnp.concatenate([W1b.T, W2b.T], axis=-1).astype(jnp.float32)
    ref2 = _reference(pre2r, att2r, Wr, b, gamma, beta)
    assert out2.shape == (B2, S2, D)
    assert jnp.allclose(out2, ref2, atol=2e-2, rtol=2e-2), "bf16 path mismatch"

    print("KERNEL_OK")
</pallas_src>

<mosaic_0001>
module attributes {stable_mosaic.version = 11 : i64} {
  func.func @_compressor_kernel(%arg0: i32, %arg1: i32, %arg2: memref<16x128xf32, #tpu.memory_space<vmem>>, %arg3: memref<16x128xf32, #tpu.memory_space<vmem>>, %arg4: memref<128x128xf32, #tpu.memory_space<vmem>>, %arg5: memref<128x128xf32, #tpu.memory_space<vmem>>, %arg6: memref<3x128xf32, #tpu.memory_space<vmem>>, %arg7: memref<16x128xf32, #tpu.memory_space<vmem>>, %arg8: memref<16x128xf32, #tpu.memory_space<vmem>>) attributes {dimension_semantics = [#tpu.dimension_semantics<parallel>, #tpu.dimension_semantics<arbitrary>], iteration_bounds = array<i64: 1, 1>, scalar_prefetch = 0 : i64, scratch_operands = 1 : i64, tpu.core_type = #tpu.core_type<tc>, window_params = [{transform_indices = @transform_0, window_bounds = array<i64: 16, 128>}, {transform_indices = @transform_1, window_bounds = array<i64: 16, 128>}, {transform_indices = @transform_2, window_bounds = array<i64: 128, 128>}, {transform_indices = @transform_3, window_bounds = array<i64: 128, 128>}, {pipeline_mode = #tpu.pipeline_mode<synchronous>, transform_indices = @transform_4, window_bounds = array<i64: 3, 128>}, {transform_indices = @transform_5, window_bounds = array<i64: 16, 128>}]} {
    %c0_i32 = arith.constant 0 : i32
    %0 = arith.cmpi eq, %arg1, %c0_i32 : i32
    %1 = arith.extui %0 : i1 to i32
    %c0_i32_0 = arith.constant 0 : i32
    %2 = arith.cmpi ne, %1, %c0_i32_0 : i32
    scf.if %2 {
      %cst_15 = arith.constant 0.000000e+00 : f32
      %16 = vector.broadcast %cst_15 : f32 to vector<16x128xf32>
      %c0_16 = arith.constant 0 : index
      %c0_17 = arith.constant 0 : index
      %17 = vector.load %arg8[%c0_16, %c0_17] : memref<16x128xf32, #tpu.memory_space<vmem>>, vector<16x128xf32>
      tpu.vector_store %arg8[%c0_16, %c0_17], %16 {strides = array<i32>} : memref<16x128xf32, #tpu.memory_space<vmem>>, vector<16x128xf32>,
    } else {
    }
    %c0 = arith.constant 0 : index
    %c0_1 = arith.constant 0 : index
    %3 = vector.load %arg2[%c0, %c0_1] : memref<16x128xf32, #tpu.memory_space<vmem>>, vector<16x128xf32>
    %c0_2 = arith.constant 0 : index
    %c0_3 = arith.constant 0 : index
    %4 = vector.load %arg3[%c0_2, %c0_3] : memref<16x128xf32, #tpu.memory_space<vmem>>, vector<16x128xf32>
    %c0_4 = arith.constant 0 : index
    %c0_5 = arith.constant 0 : index
    %5 = vector.load %arg8[%c0_4, %c0_5] : memref<16x128xf32, #tpu.memory_space<vmem>>, vector<16x128xf32>
    %c0_6 = arith.constant 0 : index
    %c0_7 = arith.constant 0 : index
    %6 = vector.load %arg4[%c0_6, %c0_7] : memref<128x128xf32, #tpu.memory_space<vmem>>, vector<128x128xf32>
    %cst = arith.constant dense<0.000000e+00> : vector<16x128xf32>
    %7 = tpu.matmul %3, %6, %cst {dimension_numbers = #tpu.dot_dimension_numbers<[1], [0], [0], [1], [0, 0, 1, 1], [], []>} : vector<16x128xf32>, vector<128x128xf32>, vector<16x128xf32> -> vector<16x128xf32>
    %c0_8 = arith.constant 0 : index
    %c0_9 = arith.constant 0 : index
    %8 = vector.load %arg5[%c0_8, %c0_9] : memref<128x128xf32, #tpu.memory_space<vmem>>, vector<128x128xf32>
    %cst_10 = arith.constant dense<0.000000e+00> : vector<16x128xf32>
    %9 = tpu.matmul %4, %8, %cst_10 {dimension_numbers = #tpu.dot_dimension_numbers<[1], [0], [0], [1], [0, 0, 1, 1], [], []>} : vector<16x128xf32>, vector<128x128xf32>, vector<16x128xf32> -> vector<16x128xf32>
    %10 = arith.addf %7, %9 : vector<16x128xf32>
    %11 = arith.addf %5, %10 : vector<16x128xf32>
    %c0_11 = arith.constant 0 : index
    %c0_12 = arith.constant 0 : index
    %12 = vector.load %arg8[%c0_11, %c0_12] : memref<16x128xf32, #tpu.memory_space<vmem>>, vector<16x128xf32>
    tpu.vector_store %arg8[%c0_11, %c0_12], %11 {strides = array<i32>} : memref<16x128xf32, #tpu.memory_space<vmem>>, vector<16x128xf32>,
    %c0_i32_13 = arith.constant 0 : i32
    %13 = arith.cmpi eq, %arg1, %c0_i32_13 : i32
    %14 = arith.extui %13 : i1 to i32
    %c0_i32_14 = arith.constant 0 : i32
    %15 = arith.cmpi ne, %14, %c0_i32_14 : i32
    scf.if %15 {
      %c0_15 = arith.constant 0 : index
      %c0_16 = arith.constant 0 : index
      %16 = vector.load %arg8[%c0_15, %c0_16] : memref<16x128xf32, #tpu.memory_space<vmem>>, vector<16x128xf32>
      %c0_17 = arith.constant 0 : index
      %c0_18 = arith.constant 0 : index
      %17 = vector.load %arg6[%c0_17, %c0_18] : memref<3x128xf32, #tpu.memory_space<vmem>>, vector<1x128xf32>
      %18 = vector.broadcast %17 : vector<1x128xf32> to vector<16x128xf32>
      %19 = arith.addf %16, %18 : vector<16x128xf32>
      %c0_19 = arith.constant 0 : index
      %c0_20 = arith.constant 0 : index
      %20 = vector.load %arg8[%c0_19, %c0_20] : memref<16x128xf32, #tpu.memory_space<vmem>>, vector<16x128xf32>
      tpu.vector_store %arg8[%c0_19, %c0_20], %19 {strides = array<i32>} : memref<16x128xf32, #tpu.memory_space<vmem>>, vector<16x128xf32>,
      %c0_21 = arith.constant 0 : index
      %c0_22 = arith.constant 0 : index
      %21 = vector.load %arg8[%c0_21, %c0_22] : memref<16x128xf32, #tpu.memory_space<vmem>>, vector<16x128xf32>
      %cst_23 = arith.constant dense<0.000000e+00> : vector<16xf32>
      %22 = vector.multi_reduction <add>, %21, %cst_23 [1] : vector<16x128xf32> to vector<16xf32>
      %23 = vector.shape_cast %22 : vector<16xf32> to vector<16x1xf32>
      %cst_24 = arith.constant 7.812500e-03 : f32
      %24 = vector.broadcast %cst_24 : f32 to vector<16x1xf32>
      %25 = arith.mulf %23, %24 : vector<16x1xf32>
      %26 = vector.broadcast %25 : vector<16x1xf32> to vector<16x128xf32>
      %27 = arith.subf %21, %26 : vector<16x128xf32>
      %28 = arith.mulf %27, %27 : vector<16x128xf32>
      %cst_25 = arith.constant dense<0.000000e+00> : vector<16xf32>
      %29 = vector.multi_reduction <add>, %28, %cst_25 [1] : vector<16x128xf32> to vector<16xf32>
      %30 = vector.shape_cast %29 : vector<16xf32> to vector<16x1xf32>
      %cst_26 = arith.constant 7.812500e-03 : f32
      %31 = vector.broadcast %cst_26 : f32 to vector<16x1xf32>
      %32 = arith.mulf %30, %31 : vector<16x1xf32>
      %cst_27 = arith.constant 9.99999974E-6 : f32
      %33 = vector.broadcast %cst_27 : f32 to vector<16x1xf32>
      %34 = arith.addf %32, %33 : vector<16x1xf32>
      %35 = math.rsqrt %34 : vector<16x1xf32>
      %36 = vector.broadcast %35 : vector<16x1xf32> to vector<16x128xf32>
      %37 = arith.mulf %27, %36 : vector<16x128xf32>
      %c1 = arith.constant 1 : index
      %c0_28 = arith.constant 0 : index
      %38 = vector.load %arg6[%c1, %c0_28] : memref<3x128xf32, #tpu.memory_space<vmem>>, vector<1x128xf32>
      %39 = vector.broadcast %38 : vector<1x128xf32> to vector<16x128xf32>
      %40 = arith.mulf %37, %39 : vector<16x128xf32>
      %c2 = arith.constant 2 : index
      %c0_29 = arith.constant 0 : index
      %41 = vector.load %arg6[%c2, %c0_29] : memref<3x128xf32, #tpu.memory_space<vmem>>, vector<1x128xf32>
      %42 = vector.broadcast %41 : vector<1x128xf32> to vector<16x128xf32>
      %43 = arith.addf %40, %42 : vector<16x128xf32>
      %c0_30 = arith.constant 0 : index
      %c0_31 = arith.constant 0 : index
      %44 = vector.load %arg7[%c0_30, %c0_31] : memref<16x128xf32, #tpu.memory_space<vmem>>, vector<16x128xf32>
      tpu.vector_store %arg7[%c0_30, %c0_31], %43 {strides = array<i32>} : memref<16x128xf32, #tpu.memory_space<vmem>>, vector<16x128xf32>,
    } else {
    }
    return
  }
  func.func @transform_0(%arg0: i32, %arg1: i32) -> (i32, i32) {
    %c0_i32 = arith.constant 0 : i32
    return %arg0, %arg1 : i32, i32
  }
  func.func @transform_1(%arg0: i32, %arg1: i32) -> (i32, i32) {
    %c0_i32 = arith.constant 0 : i32
    return %arg0, %arg1 : i32, i32
  }
  func.func @transform_2(%arg0: i32, %arg1: i32) -> (i32, i32) {
    %c0_i32 = arith.constant 0 : i32
    %c0_i32_0 = arith.constant 0 : i32
    return %arg1, %c0_i32 : i32, i32
  }
  func.func @transform_3(%arg0: i32, %arg1: i32) -> (i32, i32) {
    %c0_i32 = arith.constant 0 : i32
    %c0_i32_0 = arith.constant 0 : i32
    return %arg1, %c0_i32 : i32, i32
  }
  func.func @transform_4(%arg0: i32, %arg1: i32) -> (i32, i32) {
    %c0_i32 = arith.constant 0 : i32
    %c0_i32_0 = arith.constant 0 : i32
    %c0_i32_1 = arith.constant 0 : i32
    return %c0_i32, %c0_i32_0 : i32, i32
  }
  func.func @transform_5(%arg0: i32, %arg1: i32) -> (i32, i32) {
    %c0_i32 = arith.constant 0 : i32
    %c0_i32_0 = arith.constant 0 : i32
    return %arg0, %c0_i32 : i32, i32
  }
}

</mosaic_0001>

<bundles_post_ra>
// kernel: tpu_custom_call.1
= control target key start
LH: loop header
LB: loop body
LE: loop exit
PB: predicated region body
PF: predicated region fallthrough
CT: control target
= control target key end

     0   :  { %10 = vsyncpa [#allocation4], 0  ;;  %s786_s0 = inlined_call_operand.hbm [shape: f32[16,128], index: 0, kind: input, shape index: {}]   ;;  %s787_s1 = inlined_call_operand.hbm [shape: f32[16,128], index: 1, kind: input, shape index: {}]   ;;  %s788_s2 = inlined_call_operand.hbm [shape: f32[128,128], index: 2, kind: input, shape index: {}]   ;;  %s789_s3 = inlined_call_operand.hbm [shape: f32[128,128], index: 3, kind: input, shape index: {}]   ;;  %s790_s4 = inlined_call_operand.vmem [shape: f32[3,128], index: 4, kind: input, shape index: {}]   ;;  %s791_s5 = inlined_call_operand.hbm [shape: f32[16,128], index: 5, kind: output, shape index: {}]  }
   0x1   :  { %11 = vsyncpa [#allocation7], 0 }
   0x2   :  { %12 = vsyncpa [#allocation10], 0 }
   0x3   :  { %13 = vsyncpa [#allocation5], 0  ;;  %s651_s18 = smov [#allocation6]   ;;  %s652_s20 = smov [#allocation3]  }
   0x4   :  { %s31_s19 = sshll.u32 %s651_s18, 4  ;;  %s19_s21 = sshll.u32 %s652_s20, 4  ;;  %s32_s19 = int_to_ptr.vmem [resolvable:$true] %s31_s19  ;;  %s688_s21 = int_to_ptr.vmem [resolvable:$true] %s19_s21 }
   0x5   :  { %s533_s24 = scalar_lea.hbm %s787_s1, 256 }
   0x6   :  { %p534_p0 = scmp.ne.s32.totalorder %s787_s1, %s533_s24  ;;  %p537_p1 = scmp.lt.u32.totalorder %s533_s24, %s787_s1 }
   0x8   :  { %p539_p2 = pnand %p537_p1, %p534_p0 }
   0xa   :  { %542 = shalt.err (!%p539_p2)
}
   0xb   :  { %s543_s29 = scalar_lea.vmem %s32_s19, 256  ;;  %p548_p4 = scmp.lt.s32.totalorder %s32_s19, %s32_s19 }
   0xc   :  { %p544_p3 = scmp.ne.s32.totalorder %s32_s19, %s543_s29  ;;  %p549_p5 = scmp.lt.s32.totalorder %s543_s29, %s543_s29 }
   0xe   :  { %p550_p6 = por %p549_p5, %p548_p4 }
  0x10   :  { %p551_p7 = pnand %p550_p6, %p544_p3 }
  0x12   :  { %554 = shalt.err (!%p551_p7)
}
  0x13   :  { %s653_s30 = smov 128   ;;  %s654_s6 = smov 8  }
  0x14   :  { %37 = dma.hbm_to_vmem [thread:$0]  %s787_s1, 256, %s32_s19, [#allocation7], %s653_s30, %s653_s30, %s654_s6  }
  0x15   :  { %s555_s11 = scalar_lea.hbm %s786_s0, 256 }
  0x16   :  { %p556_p8 = scmp.ne.s32.totalorder %s786_s0, %s555_s11  ;;  %p559_p9 = scmp.lt.u32.totalorder %s555_s11, %s786_s0 }
  0x18   :  { %p561_p10 = pnand %p559_p9, %p556_p8 }
  0x1a   :  { %564 = shalt.err (!%p561_p10)
}
  0x1b   :  { %s565_s16 = scalar_lea.vmem %s688_s21, 256  ;;  %p570_p12 = scmp.lt.s32.totalorder %s688_s21, %s688_s21 }
  0x1c   :  { %p566_p11 = scmp.ne.s32.totalorder %s688_s21, %s565_s16  ;;  %p571_p13 = scmp.lt.s32.totalorder %s565_s16, %s565_s16 }
  0x1e   :  { %p572_p0 = por %p571_p13, %p570_p12 }
  0x20   :  { %p573_p1 = pnand %p572_p0, %p566_p11 }
  0x22   :  { %576 = shalt.err (!%p573_p1)
}
  0x23   :  { %25 = dma.hbm_to_vmem [thread:$0]  %s786_s0, 256, %s688_s21, [#allocation4], %s653_s30, %s653_s30, %s654_s6  }
  0x24   :  { %s655_s18 = smov [#allocation8]   ;;  %s656_s20 = smov [#allocation9]  }
  0x25   :  { %s43_s19 = sshll.u32 %s655_s18, 4  ;;  %s55_s22 = sshll.u32 %s656_s20, 4  ;;  %s44_s19 = int_to_ptr.vmem [resolvable:$true] %s43_s19  ;;  %s725_s22 = int_to_ptr.vmem [resolvable:$true] %s55_s22 }
  0x26   :  { %s577_s25 = scalar_lea.hbm %s788_s2, 2048 }
  0x27   :  { %p578_p2 = scmp.ne.s32.totalorder %s788_s2, %s577_s25  ;;  %p581_p3 = scmp.lt.u32.totalorder %s577_s25, %s788_s2 }
  0x29   :  { %p583_p4 = pnand %p581_p3, %p578_p2 }
  0x2b   :  { %586 = shalt.err (!%p583_p4)
}
  0x2c   :  { %s587_s0 = scalar_lea.vmem %s44_s19, 2048  ;;  %p592_p6 = scmp.lt.s32.totalorder %s44_s19, %s44_s19 }
  0x2d   :  { %p588_p5 = scmp.ne.s32.totalorder %s44_s19, %s587_s0  ;;  %p593_p7 = scmp.lt.s32.totalorder %s587_s0, %s587_s0 }
  0x2f   :  { %p594_p8 = por %p593_p7, %p592_p6 }
  0x31   :  { %p595_p9 = pnand %p594_p8, %p588_p5 }
  0x33   :  { %598 = shalt.err (!%p595_p9)
}
  0x34   :  { %49 = dma.hbm_to_vmem [thread:$0]  %s788_s2, 2048, %s44_s19, [#allocation7], %s653_s30, %s653_s30, %s654_s6  }
  0x35   :  { %s599_s10 = scalar_lea.hbm %s789_s3, 2048 }
  0x36   :  { %p600_p10 = scmp.ne.s32.totalorder %s789_s3, %s599_s10  ;;  %p603_p11 = scmp.lt.u32.totalorder %s599_s10, %s789_s3 }
  0x38   :  { %p605_p12 = pnand %p603_p11, %p600_p10 }
  0x3a   :  { %608 = shalt.err (!%p605_p12)
}
  0x3b   :  { %s609_s15 = scalar_lea.vmem %s725_s22, 2048  ;;  %p614_p0 = scmp.lt.s32.totalorder %s725_s22, %s725_s22 }
  0x3c   :  { %p610_p13 = scmp.ne.s32.totalorder %s725_s22, %s609_s15  ;;  %p615_p1 = scmp.lt.s32.totalorder %s609_s15, %s609_s15 }
  0x3e   :  { %p616_p2 = por %p615_p1, %p614_p0 }
  0x40   :  { %p617_p3 = pnand %p616_p2, %p610_p13 }
  0x42   :  { %620 = shalt.err (!%p617_p3)
}
  0x43   :  { %61 = dma.hbm_to_vmem [thread:$0]  %s789_s3, 2048, %s725_s22, [#allocation10], %s653_s30, %s653_s30, %s654_s6  }
  0x44   :  { %643 = dma.done.wait [#allocation4], 256  }
  0x45   :  { %644 = vsyncadd [#allocation4], 4294967040 }
  0x46   :  { %645 = dma.done.wait [#allocation7], 2304  }
  0x47   :  { %646 = vsyncadd [#allocation7], 4294964992 }
  0x48   :  { %647 = dma.done.wait [#allocation10], 2048  }
  0x49   :  { %648 = vsyncadd [#allocation10], 4294965248  ;;  %v104_v0 = vld [vmem:[#allocation9] sm:$0xff]  ;;  %v105_v1 = vld [vmem:[#allocation9 + $0x8] sm:$0xff]  ;;  %s657_s22 = smov [#allocation11]  }
  0x4a   :  { %v88_v2 = vld [vmem:[#allocation8] sm:$0xff]  ;;  %v456_v3 = vpack.c.bf16 %v105_v1, %v104_v0  ;;  %v89_v4 = vld [vmem:[#allocation8 + $0x8] sm:$0xff]  ;;  %v106_v5 = vld [vmem:[#allocation9 + $0x10] sm:$0xff]  ;;  %s333_s23 = sshll.u32 %s657_s22, 4  ;;  %s334_s23 = int_to_ptr.vmem [resolvable:$true] %s333_s23 }
  0x4b   :  { %v107_v6 = vld [vmem:[#allocation9 + $0x18] sm:$0xff]  ;;  %v488_v7 = vpack.c.bf16 %v89_v4, %v88_v2  ;;  %v90_v9 = vld [vmem:[#allocation8 + $0x10] sm:$0xff]  ;;  %v108_v11 = vld [vmem:[#allocation9 + $0x20] sm:$0xff]  ;;  %s621_s24 = scalar_lea.vmem %s334_s23, 256  ;;  %p626_p5 = scmp.lt.s32.totalorder %s334_s23, %s334_s23 }
  0x4c   :  { %v460_v8 = vpack.c.bf16 %v107_v6, %v106_v5  ;;  %v91_v10 = vld [vmem:[#allocation8 + $0x18] sm:$0xff]  ;;  %457 = vmatprep.subr.bf16.mxu1 %v456_v3  ;;  %v109_v13 = vld [vmem:[#allocation9 + $0x28] sm:$0xff]  ;;  %v92_v14 = vld [vmem:[#allocation8 + $0x20] sm:$0xff]  ;;  %p622_p4 = scmp.ne.s32.totalorder %s334_s23, %s621_s24  ;;  %p627_p6 = scmp.lt.s32.totalorder %s621_s24, %s621_s24 }
  0x4d   :  { %v492_v12 = vpack.c.bf16 %v91_v10, %v90_v9  ;;  %v93_v15 = vld [vmem:[#allocation8 + $0x28] sm:$0xff]  ;;  %489 = vmatprep.subr.bf16.mxu0 %v488_v7  ;;  %459 = vmatpush3.bf16.msra.mxu1 %v456_v3  ;;  %v464_v16 = vpack.c.bf16 %v109_v13, %v108_v11  ;;  %v110_v18 = vld [vmem:[#allocation9 + $0x30] sm:$0xff]  ;;  %v111_v19 = vld [vmem:[#allocation9 + $0x38] sm:$0xff] }
  0x4e   :  { %491 = vmatpush3.bf16.msra.mxu0 %v488_v7  ;;  %461 = vmatprep.subr.bf16.mxu1 %v460_v8  ;;  %v496_v17 = vpack.c.bf16 %v93_v15, %v92_v14  ;;  %v94_v20 = vld [vmem:[#allocation8 + $0x30] sm:$0xff]  ;;  %v95_v21 = vld [vmem:[#allocation8 + $0x38] sm:$0xff]  ;;  %v468_v22 = vpack.c.bf16 %v111_v19, %v110_v18  ;;  %v112_v24 = vld [vmem:[#allocation9 + $0x40] sm:$0xff]  ;;  %p628_p7 = por %p627_p6, %p626_p5 }
  0x4f   :  { %493 = vmatprep.subr.bf16.mxu0 %v492_v12  ;;  %v500_v23 = vpack.c.bf16 %v95_v21, %v94_v20  ;;  %v113_v25 = vld [vmem:[#allocation9 + $0x48] sm:$0xff]  ;;  %v84_v26 = vld [vmem:[#allocation6] sm:$0xff]  ;;  %v96_v27 = vld [vmem:[#allocation8 + $0x40] sm:$0xff] }
  0x50   :  { %v97_v28 = vld [vmem:[#allocation8 + $0x48] sm:$0xff]  ;;  %418 = vmatprep.mubr.f32.mxu1 %v84_v26  ;;  %v82_v29 = vld [vmem:[#allocation3] sm:$0xff]  ;;  %v472_v30 = vpack.c.bf16 %v113_v25, %v112_v24  ;;  %v114_v32 = vld [vmem:[#allocation9 + $0x50] sm:$0xff]  ;;  %p629_p8 = pnand %p628_p7, %p622_p4 }
  0x51   :  { %463 = vmatpush3.bf16.msra.mxu1 %v460_v8  ;;  %453 = vmatprep.mubr.f32.mxu0 %v82_v29  ;;  %v504_v31 = vpack.c.bf16 %v97_v28, %v96_v27  ;;  %v115_v33 = vld [vmem:[#allocation9 + $0x58] sm:$0xff]  ;;  %v98_v34 = vld [vmem:[#allocation8 + $0x50] sm:$0xff]  ;;  %v116_v38 = vld [vmem:[#allocation9 + $0x60] sm:$0xff] }
  0x52   :  { %495 = vmatpush3.bf16.msra.mxu0 %v492_v12  ;;  %465 = vmatprep.subr.bf16.mxu1 %v464_v16  ;;  %v99_v35 = vld [vmem:[#allocation8 + $0x58] sm:$0xff]  ;;  %v476_v36 = vpack.c.bf16 %v115_v33, %v114_v32  ;;  %v117_v39 = vld [vmem:[#allocation9 + $0x68] sm:$0xff]  ;;  %v100_v40 = vld [vmem:[#allocation8 + $0x60] sm:$0xff] }
  0x53   :  { %497 = vmatprep.subr.bf16.mxu0 %v496_v17  ;;  %v508_v37 = vpack.c.bf16 %v99_v35, %v98_v34  ;;  %v101_v41 = vld [vmem:[#allocation8 + $0x68] sm:$0xff]  ;;  %v480_v42 = vpack.c.bf16 %v117_v39, %v116_v38  ;;  %v118_v44 = vld [vmem:[#allocation9 + $0x70] sm:$0xff]  ;;  %v119_v45 = vld [vmem:[#allocation9 + $0x78] sm:$0xff] }
  0x54   :  { %v512_v43 = vpack.c.bf16 %v101_v41, %v100_v40  ;;  %v102_v46 = vld [vmem:[#allocation8 + $0x70] sm:$0xff]  ;;  %v103_v47 = vld [vmem:[#allocation8 + $0x78] sm:$0xff]  ;;  %v484_v48 = vpack.c.bf16 %v119_v45, %v118_v44  ;;  %v83_v51 = vld [vmem:[#allocation3 + $0x8] sm:$0xff] }
  0x55   :  { %467 = vmatpush3.bf16.msra.mxu1 %v464_v16  ;;  %v516_v49 = vpack.c.bf16 %v103_v47, %v102_v46  ;;  %v85_v50 = vld [vmem:[#allocation6 + $0x8] sm:$0xff]  ;;  %v347_v57 = vld [vmem:[%s790_s4] ss:$0 sm:$0xff]  ;;  %v348_v12 = vld [vmem:[%s790_s4 + $0x1] ss:$0 sm:$0xff] }
  0x56   :  { %499 = vmatpush3.bf16.msra.mxu0 %v496_v17  ;;  %469 = vmatprep.subr.bf16.mxu1 %v468_v22  ;;  %v349_v14 = vld [vmem:[%s790_s4 + $0x2] ss:$0 sm:$0xff] }
  0x57   :  { %501 = vmatprep.subr.bf16.mxu0 %v500_v23 }
  0x59   :  { %471 = vmatpush3.bf16.msra.mxu1 %v468_v22 }
  0x5a   :  { %503 = vmatpush3.bf16.msra.mxu0 %v500_v23  ;;  %473 = vmatprep.subr.bf16.mxu1 %v472_v30 }
  0x5b   :  { %505 = vmatprep.subr.bf16.mxu0 %v504_v31 }
  0x5d   :  { %475 = vmatpush3.bf16.msra.mxu1 %v472_v30 }
  0x5e   :  { %507 = vmatpush3.bf16.msra.mxu0 %v504_v31  ;;  %477 = vmatprep.subr.bf16.mxu1 %v476_v36 }
  0x5f   :  { %509 = vmatprep.subr.bf16.mxu0 %v508_v37 }
  0x61   :  { %479 = vmatpush3.bf16.msra.mxu1 %v476_v36 }
  0x62   :  { %511 = vmatpush3.bf16.msra.mxu0 %v508_v37  ;;  %481 = vmatprep.subr.bf16.mxu1 %v480_v42 }
  0x63   :  { %513 = vmatprep.subr.bf16.mxu0 %v512_v43 }
  0x65   :  { %483 = vmatpush3.bf16.msra.mxu1 %v480_v42 }
  0x66   :  { %515 = vmatpush3.bf16.msra.mxu0 %v512_v43  ;;  %485 = vmatprep.subr.bf16.mxu1 %v484_v48 }
  0x67   :  { %517 = vmatprep.subr.bf16.mxu0 %v516_v49 }
  0x69   :  { %487 = vmatpush3.bf16.msra.mxu1 %v484_v48 }
  0x6a   :  { %519 = vmatpush3.bf16.msra.mxu0 %v516_v49 }
  0x6c   :  { %419 = vmatmul.mubr.f32.vlgmr.msra.gmra.mrb[0].mxu1 %v85_v50 }
  0x6d   :  { %454 = vmatmul.mubr.f32.vlgmr.msra.gmra.mrb[0].mxu0 %v83_v51 }
 0x13f   :  { %v420_v52 = vpop.f32.mrb[0].mxu1 }
 0x140   :  { %v455_v53 = vpop.f32.mrb[0].mxu0  ;;  %v186_v54 = vpop.f32.mrb[1].mxu1 }
 0x141   :  { %v267_v55 = vadd.f32 %v455_v53, %v420_v52  ;;  %v261_v56 = vpop.f32.mrb[1].mxu0 }
 0x142   :  { %v262_v58 = vadd.f32 %v261_v56, %v186_v54 }
 0x143   :  { %v285_v60 = vadd.f32 %v347_v57, %v267_v55 }
 0x144   :  { %v284_v59 = vadd.f32 %v347_v57, %v262_v58 }
 0x146   :  { %290 = vadd.xlane.f32.xlu0 %v284_v59 }
 0x14a   :  { %292 = vadd.xlane.f32.xlu0 %v285_v60 }
 0x1d3   :  { %v291_v61 = vpop.xlane.xlu0 %290 }
 0x1d4   :  { %v294_v62 = vmul.f32 0.0078125, %v291_v61 }
 0x1d6   :  { %v296_v63 = vsub.f32 %v284_v59, %v294_v62 }
 0x1d7   :  { %v293_v0 = vpop.xlane.xlu0 %292 }
 0x1d8   :  { %v295_v1 = vmul.f32 0.0078125, %v293_v0  ;;  %v298_v2 = vmul.f32 %v296_v63, %v296_v63 }
 0x1da   :  { %v297_v3 = vsub.f32 %v285_v60, %v295_v1  ;;  %300 = vadd.xlane.f32.xlu1 %v298_v2 }
 0x1dc   :  { %v299_v4 = vmul.f32 %v297_v3, %v297_v3 }
 0x1de   :  { %302 = vadd.xlane.f32.xlu1 %v299_v4 }
 0x267   :  { %v301_v5 = vpop.xlane.xlu1 %300 }
 0x268   :  { %v304_v6 = vmul.f32 0.0078125, %v301_v5 }
 0x26a   :  { %v306_v7 = vadd.f32 1e-05, %v304_v6 }
 0x26b   :  { %v303_v8 = vpop.xlane.xlu1 %302 }
 0x26c   :  { %529 = vrsqrt.f32 %v306_v7  ;;  %v305_v9 = vmul.f32 0.0078125, %v303_v8 }
 0x26e   :  { %v307_v10 = vadd.f32 1e-05, %v305_v9 }
 0x270   :  { %531 = vrsqrt.f32 %v307_v10 }
 0x276   :  { %v530_v11 = vpop.eup %529 }
 0x277   :  { %v310_v13 = vmul.f32 %v530_v11, %v296_v63 }
 0x279   :  { %v317_v15 = vmul.f32 %v348_v12, %v310_v13 }
 0x27a   :  { %v532_v16 = vpop.eup %531 }
 0x27b   :  { %v311_v17 = vmul.f32 %v532_v16, %v297_v3  ;;  %v324_v18 = vadd.f32 %v349_v14, %v317_v15 }
 0x27d   :  { %v318_v19 = vmul.f32 %v348_v12, %v311_v17  ;;  %326 = vst [vmem:[#allocation11] sm:$0xff] %v324_v18 }
 0x27f   :  { %v325_v20 = vadd.f32 %v349_v14, %v318_v19 }
 0x281   :  { %327 = vst [vmem:[#allocation11 + $0x8] sm:$0xff] %v325_v20 }
 0x282   :  { %632 = shalt.err (!%p629_p8)
}
 0x283   :  { %s633_s26 = scalar_lea.hbm %s791_s5, 256 }
 0x284   :  { %p634_p9 = scmp.ne.s32.totalorder %s791_s5, %s633_s26  ;;  %p637_p10 = scmp.lt.u32.totalorder %s633_s26, %s791_s5 }
 0x286   :  { %p639_p11 = pnand %p637_p10, %p634_p9 }
 0x288   :  { %642 = shalt.err (!%p639_p11)
}
 0x289   :  { %339 = dma.vmem_to_hbm [thread:$0]  %s334_s23, 256, %s791_s5, [#allocation5], %s653_s30, %s653_s30, %s654_s6  }
 0x28a   :  { %649 = dma.done.wait [#allocation5], 256  }
 0x28b   :  { %650 = vsyncadd [#allocation5], 4294967040 }
 0x28c   :  { %343 = vsyncpa [#allocation4], 1 }
 0x28d   :  { %344 = vsyncpa [#allocation7], 1 }
 0x28e   :  { %345 = vsyncpa [#allocation10], 1 }
 0x28f   :  { %346 = vsyncpa [#allocation5], 1 }

</bundles_post_ra>
